<compile_context>
chip_gen: v7x
topology: tpu7x:2x2x1
jax: 0.10.0
libtpu: 0.0.40
codegen_flags: <defaults>
</compile_context>

<pallas_src>
import jax
import jax.numpy as jnp
from jax.experimental import pallas as pl
from jax.experimental.pallas import tpu as pltpu

# ---- model dims (small, consistent with the module) ----
N = 64            # number of samples (rows); multiple of 8
IN_C = 16
HID_C = 32
OUT_C = 8
LN_EPS = 1e-5

W_ROWS = IN_C + HID_C + HID_C   # 80: W1^T [0:16), W2^T [16:48), padded W3^T [48:80)
V_ROWS = 8                      # b1, g1, be1, b2, g2, be2, b3(padded), zero


def _layernorm(h, gamma, beta):
    # var = E[x^2] - E[x]^2: the two cross-lane reductions are independent,
    # shortening the XLU dependency chain vs. mean -> center -> var.
    m1 = jnp.mean(h, axis=-1, keepdims=True)
    m2 = jnp.mean(h * h, axis=-1, keepdims=True)
    var = m2 - m1 * m1
    inv = jax.lax.rsqrt(var + LN_EPS)
    return (h - m1) * inv * gamma + beta


def mlp_kernel(x_ref, w_ref, v_ref, o_ref):
    x = x_ref[...]                                   # (N, IN_C) f32

    # bf16 weight slab, sublane-aligned static slices (16 and 48 are multiples
    # of the bf16 sublane packing).
    w1 = w_ref[0:IN_C, :]                            # (IN_C, HID_C)
    w2 = w_ref[IN_C:IN_C + HID_C, :]                 # (HID_C, HID_C)
    w3 = w_ref[IN_C + HID_C:W_ROWS, :]               # (HID_C, HID_C), cols OUT_C: are 0

    # f32 vector slab (full-width 32-lane rows, no masked lane sub-slices).
    b1 = v_ref[0:1, :]
    g1 = v_ref[1:2, :]
    be1 = v_ref[2:3, :]
    b2 = v_ref[3:4, :]
    g2 = v_ref[4:5, :]
    be2 = v_ref[5:6, :]
    b3 = v_ref[6:7, :]                               # (1, HID_C), lanes OUT_C: are 0

    # --- layer 1: Linear -> ReLU -> LayerNorm -> (dropout: eval no-op) ---
    h = jnp.dot(x.astype(jnp.bfloat16), w1, preferred_element_type=jnp.float32) + b1
    h = jnp.maximum(h, 0.0)
    h = _layernorm(h, g1, be1)
    # TODO(synk): dropout omitted (module is in eval mode; training-mode dropout
    # would use pltpu.prng_random_bits for the mask).

    # --- layer 2: Linear -> ReLU -> LayerNorm -> (dropout: eval no-op) ---
    h = jnp.dot(h.astype(jnp.bfloat16), w2, preferred_element_type=jnp.float32) + b2
    h = jnp.maximum(h, 0.0)
    h = _layernorm(h, g2, be2)

    # --- final layer: Linear only; padded columns of w3/b3 are zero and are
    # sliced away before the (N, OUT_C) store.
    res = jnp.dot(h.astype(jnp.bfloat16), w3, preferred_element_type=jnp.float32) + b3
    o_ref[...] = res[:, :OUT_C].astype(o_ref.dtype)


def pack_params(raw):
    """Pack the 10 per-layer tensors into a bf16 weight slab + f32 vector slab."""
    (w1t, b1, g1, be1, w2t, b2, g2, be2, w3t, b3) = raw

    w3p = jnp.zeros((HID_C, HID_C), jnp.float32).at[:, :OUT_C].set(w3t)
    w = jnp.concatenate([w1t, w2t, w3p], axis=0).astype(jnp.bfloat16)   # (80, 32) bf16

    v = jnp.zeros((V_ROWS, HID_C), jnp.float32)
    v = v.at[0, :].set(b1[0])
    v = v.at[1, :].set(g1[0])
    v = v.at[2, :].set(be1[0])
    v = v.at[3, :].set(b2[0])
    v = v.at[4, :].set(g2[0])
    v = v.at[5, :].set(be2[0])
    v = v.at[6, :OUT_C].set(b3[0])
    return w, v


def mlp_forward(x, w, v):
    n, _ = x.shape
    assert n % 8 == 0

    full = lambda i: (0, 0)   # single grid step: everything is one whole block

    return pl.pallas_call(
        mlp_kernel,
        out_shape=jax.ShapeDtypeStruct((n, OUT_C), jnp.float32),
        grid_spec=pltpu.PrefetchScalarGridSpec(
            num_scalar_prefetch=0,
            grid=(1,),
            in_specs=[
                pl.BlockSpec((n, IN_C), full),          # x (f32)
                pl.BlockSpec((W_ROWS, HID_C), full),    # packed W1^T|W2^T|W3^T (bf16)
                pl.BlockSpec((V_ROWS, HID_C), full),    # packed bias / LN vectors (f32)
            ],
            out_specs=pl.BlockSpec((n, OUT_C), full),
        ),
        compiler_params=pltpu.CompilerParams(
            dimension_semantics=("arbitrary",)),
    )(x, w, v)


def init_params(key):
    """Deterministic init matching PyTorch shapes (Linear: U(-1/sqrt(fan_in), ...))."""
    def linear(key, fan_in, fan_out):
        kw, kb = jax.random.split(key)
        bound = 1.0 / jnp.sqrt(fan_in)
        # stored pre-transposed: [fan_in, fan_out]
        wt = jax.random.uniform(kw, (fan_in, fan_out), jnp.float32, -bound, bound)
        b = jax.random.uniform(kb, (1, fan_out), jnp.float32, -bound, bound)
        return wt, b

    k1, k2, k3 = jax.random.split(key, 3)
    w1t, b1 = linear(k1, IN_C, HID_C)
    w2t, b2 = linear(k2, HID_C, HID_C)
    w3t, b3 = linear(k3, HID_C, OUT_C)
    # LayerNorm default init: weight=1, bias=0
    g1 = jnp.ones((1, HID_C), jnp.float32)
    be1 = jnp.zeros((1, HID_C), jnp.float32)
    g2 = jnp.ones((1, HID_C), jnp.float32)
    be2 = jnp.zeros((1, HID_C), jnp.float32)
    return (w1t, b1, g1, be1, w2t, b2, g2, be2, w3t, b3)


def mlp_reference(x, raw):
    """Pure-JAX f32 reference mirroring the PyTorch forward (eval mode)."""
    (w1t, b1, g1, be1, w2t, b2, g2, be2, w3t, b3) = raw

    def ln(h, gamma, beta):
        mu = jnp.mean(h, axis=-1, keepdims=True)
        var = jnp.mean((h - mu) ** 2, axis=-1, keepdims=True)
        return (h - mu) * jax.lax.rsqrt(var + LN_EPS) * gamma + beta

    h = x @ w1t + b1
    h = jnp.maximum(h, 0.0)
    h = ln(h, g1, be1)
    h = h @ w2t + b2
    h = jnp.maximum(h, 0.0)
    h = ln(h, g2, be2)
    return h @ w3t + b3


if __name__ == "__main__":
    key = jax.random.PRNGKey(0)
    kx, kp = jax.random.split(key)
    x = jax.random.normal(kx, (N, IN_C), jnp.float32)
    raw = init_params(kp)
    w, v = pack_params(raw)

    out = mlp_forward(x, w, v)
    out = jax.block_until_ready(out)

    ref = mlp_reference(x, raw)
    assert out.shape == (N, OUT_C)
    # bf16 MXU operands -> loosened tolerance vs the f32 reference.
    assert jnp.allclose(out, ref, atol=2e-2, rtol=2e-2), "mismatch vs JAX reference"

    print("KERNEL_OK")
</pallas_src>

<mosaic_0001>
module attributes {stable_mosaic.version = 11 : i64} {
  func.func @mlp_kernel(%arg0: i32, %arg1: memref<64x16xf32, #tpu.memory_space<vmem>>, %arg2: memref<80x32xbf16, #tpu.memory_space<vmem>>, %arg3: memref<8x32xf32, #tpu.memory_space<vmem>>, %arg4: memref<64x8xf32, #tpu.memory_space<vmem>>) attributes {dimension_semantics = [#tpu.dimension_semantics<arbitrary>], iteration_bounds = array<i64: 1>, scalar_prefetch = 0 : i64, scratch_operands = 0 : i64, tpu.core_type = #tpu.core_type<tc>, window_params = [{pipeline_mode = #tpu.pipeline_mode<synchronous>, transform_indices = @transform_0, window_bounds = array<i64: 64, 16>}, {pipeline_mode = #tpu.pipeline_mode<synchronous>, transform_indices = @transform_1, window_bounds = array<i64: 80, 32>}, {pipeline_mode = #tpu.pipeline_mode<synchronous>, transform_indices = @transform_2, window_bounds = array<i64: 8, 32>}, {pipeline_mode = #tpu.pipeline_mode<synchronous>, transform_indices = @transform_3, window_bounds = array<i64: 64, 8>}]} {
    %c0 = arith.constant 0 : index
    %c0_0 = arith.constant 0 : index
    %0 = vector.load %arg1[%c0, %c0_0] : memref<64x16xf32, #tpu.memory_space<vmem>>, vector<64x16xf32>
    %c0_1 = arith.constant 0 : index
    %c0_2 = arith.constant 0 : index
    %1 = vector.load %arg2[%c0_1, %c0_2] : memref<80x32xbf16, #tpu.memory_space<vmem>>, vector<16x32xbf16>
    %c16 = arith.constant 16 : index
    %c0_3 = arith.constant 0 : index
    %2 = vector.load %arg2[%c16, %c0_3] : memref<80x32xbf16, #tpu.memory_space<vmem>>, vector<32x32xbf16>
    %c48 = arith.constant 48 : index
    %c0_4 = arith.constant 0 : index
    %3 = vector.load %arg2[%c48, %c0_4] : memref<80x32xbf16, #tpu.memory_space<vmem>>, vector<32x32xbf16>
    %c0_5 = arith.constant 0 : index
    %c0_6 = arith.constant 0 : index
    %4 = vector.load %arg3[%c0_5, %c0_6] : memref<8x32xf32, #tpu.memory_space<vmem>>, vector<1x32xf32>
    %c1 = arith.constant 1 : index
    %c0_7 = arith.constant 0 : index
    %5 = vector.load %arg3[%c1, %c0_7] : memref<8x32xf32, #tpu.memory_space<vmem>>, vector<1x32xf32>
    %c2 = arith.constant 2 : index
    %c0_8 = arith.constant 0 : index
    %6 = vector.load %arg3[%c2, %c0_8] : memref<8x32xf32, #tpu.memory_space<vmem>>, vector<1x32xf32>
    %c3 = arith.constant 3 : index
    %c0_9 = arith.constant 0 : index
    %7 = vector.load %arg3[%c3, %c0_9] : memref<8x32xf32, #tpu.memory_space<vmem>>, vector<1x32xf32>
    %c4 = arith.constant 4 : index
    %c0_10 = arith.constant 0 : index
    %8 = vector.load %arg3[%c4, %c0_10] : memref<8x32xf32, #tpu.memory_space<vmem>>, vector<1x32xf32>
    %c5 = arith.constant 5 : index
    %c0_11 = arith.constant 0 : index
    %9 = vector.load %arg3[%c5, %c0_11] : memref<8x32xf32, #tpu.memory_space<vmem>>, vector<1x32xf32>
    %c6 = arith.constant 6 : index
    %c0_12 = arith.constant 0 : index
    %10 = vector.load %arg3[%c6, %c0_12] : memref<8x32xf32, #tpu.memory_space<vmem>>, vector<1x32xf32>
    %11 = arith.truncf %0 : vector<64x16xf32> to vector<64x16xbf16>
    %cst = arith.constant dense<0.000000e+00> : vector<64x32xf32>
    %12 = tpu.matmul %11, %1, %cst {dimension_numbers = #tpu.dot_dimension_numbers<[1], [0], [0], [1], [0, 0, 1, 1], [], []>} : vector<64x16xbf16>, vector<16x32xbf16>, vector<64x32xf32> -> vector<64x32xf32>
    %13 = vector.broadcast %4 : vector<1x32xf32> to vector<64x32xf32>
    %14 = arith.addf %12, %13 : vector<64x32xf32>
    %cst_13 = arith.constant 0.000000e+00 : f32
    %15 = vector.broadcast %cst_13 : f32 to vector<64x32xf32>
    %16 = arith.maximumf %14, %15 : vector<64x32xf32>
    %cst_14 = arith.constant dense<0.000000e+00> : vector<64xf32>
    %17 = vector.multi_reduction <add>, %16, %cst_14 [1] : vector<64x32xf32> to vector<64xf32>
    %18 = vector.shape_cast %17 : vector<64xf32> to vector<64x1xf32>
    %cst_15 = arith.constant 3.200000e+01 : f32
    %19 = vector.broadcast %cst_15 : f32 to vector<64x1xf32>
    %20 = arith.divf %18, %19 : vector<64x1xf32>
    %21 = arith.mulf %16, %16 : vector<64x32xf32>
    %cst_16 = arith.constant dense<0.000000e+00> : vector<64xf32>
    %22 = vector.multi_reduction <add>, %21, %cst_16 [1] : vector<64x32xf32> to vector<64xf32>
    %23 = vector.shape_cast %22 : vector<64xf32> to vector<64x1xf32>
    %cst_17 = arith.constant 3.200000e+01 : f32
    %24 = vector.broadcast %cst_17 : f32 to vector<64x1xf32>
    %25 = arith.divf %23, %24 : vector<64x1xf32>
    %26 = arith.mulf %20, %20 : vector<64x1xf32>
    %27 = arith.subf %25, %26 : vector<64x1xf32>
    %cst_18 = arith.constant 9.99999974E-6 : f32
    %28 = vector.broadcast %cst_18 : f32 to vector<64x1xf32>
    %29 = arith.addf %27, %28 : vector<64x1xf32>
    %30 = math.rsqrt %29 : vector<64x1xf32>
    %31 = vector.broadcast %20 : vector<64x1xf32> to vector<64x32xf32>
    %32 = arith.subf %16, %31 : vector<64x32xf32>
    %33 = vector.broadcast %30 : vector<64x1xf32> to vector<64x32xf32>
    %34 = arith.mulf %32, %33 : vector<64x32xf32>
    %35 = vector.broadcast %5 : vector<1x32xf32> to vector<64x32xf32>
    %36 = arith.mulf %34, %35 : vector<64x32xf32>
    %37 = vector.broadcast %6 : vector<1x32xf32> to vector<64x32xf32>
    %38 = arith.addf %36, %37 : vector<64x32xf32>
    %39 = arith.truncf %38 : vector<64x32xf32> to vector<64x32xbf16>
    %cst_19 = arith.constant dense<0.000000e+00> : vector<64x32xf32>
    %40 = tpu.matmul %39, %2, %cst_19 {dimension_numbers = #tpu.dot_dimension_numbers<[1], [0], [0], [1], [0, 0, 1, 1], [], []>} : vector<64x32xbf16>, vector<32x32xbf16>, vector<64x32xf32> -> vector<64x32xf32>
    %41 = vector.broadcast %7 : vector<1x32xf32> to vector<64x32xf32>
    %42 = arith.addf %40, %41 : vector<64x32xf32>
    %cst_20 = arith.constant 0.000000e+00 : f32
    %43 = vector.broadcast %cst_20 : f32 to vector<64x32xf32>
    %44 = arith.maximumf %42, %43 : vector<64x32xf32>
    %cst_21 = arith.constant dense<0.000000e+00> : vector<64xf32>
    %45 = vector.multi_reduction <add>, %44, %cst_21 [1] : vector<64x32xf32> to vector<64xf32>
    %46 = vector.shape_cast %45 : vector<64xf32> to vector<64x1xf32>
    %cst_22 = arith.constant 3.200000e+01 : f32
    %47 = vector.broadcast %cst_22 : f32 to vector<64x1xf32>
    %48 = arith.divf %46, %47 : vector<64x1xf32>
    %49 = arith.mulf %44, %44 : vector<64x32xf32>
    %cst_23 = arith.constant dense<0.000000e+00> : vector<64xf32>
    %50 = vector.multi_reduction <add>, %49, %cst_23 [1] : vector<64x32xf32> to vector<64xf32>
    %51 = vector.shape_cast %50 : vector<64xf32> to vector<64x1xf32>
    %cst_24 = arith.constant 3.200000e+01 : f32
    %52 = vector.broadcast %cst_24 : f32 to vector<64x1xf32>
    %53 = arith.divf %51, %52 : vector<64x1xf32>
    %54 = arith.mulf %48, %48 : vector<64x1xf32>
    %55 = arith.subf %53, %54 : vector<64x1xf32>
    %cst_25 = arith.constant 9.99999974E-6 : f32
    %56 = vector.broadcast %cst_25 : f32 to vector<64x1xf32>
    %57 = arith.addf %55, %56 : vector<64x1xf32>
    %58 = math.rsqrt %57 : vector<64x1xf32>
    %59 = vector.broadcast %48 : vector<64x1xf32> to vector<64x32xf32>
    %60 = arith.subf %44, %59 : vector<64x32xf32>
    %61 = vector.broadcast %58 : vector<64x1xf32> to vector<64x32xf32>
    %62 = arith.mulf %60, %61 : vector<64x32xf32>
    %63 = vector.broadcast %8 : vector<1x32xf32> to vector<64x32xf32>
    %64 = arith.mulf %62, %63 : vector<64x32xf32>
    %65 = vector.broadcast %9 : vector<1x32xf32> to vector<64x32xf32>
    %66 = arith.addf %64, %65 : vector<64x32xf32>
    %67 = arith.truncf %66 : vector<64x32xf32> to vector<64x32xbf16>
    %cst_26 = arith.constant dense<0.000000e+00> : vector<64x32xf32>
    %68 = tpu.matmul %67, %3, %cst_26 {dimension_numbers = #tpu.dot_dimension_numbers<[1], [0], [0], [1], [0, 0, 1, 1], [], []>} : vector<64x32xbf16>, vector<32x32xbf16>, vector<64x32xf32> -> vector<64x32xf32>
    %69 = vector.broadcast %10 : vector<1x32xf32> to vector<64x32xf32>
    %70 = arith.addf %68, %69 : vector<64x32xf32>
    %71 = vector.extract_strided_slice %70 {offsets = [0, 0], sizes = [64, 8], strides = [1, 1]} : vector<64x32xf32> to vector<64x8xf32>
    %c0_27 = arith.constant 0 : index
    %c0_28 = arith.constant 0 : index
    %72 = vector.load %arg4[%c0_27, %c0_28] : memref<64x8xf32, #tpu.memory_space<vmem>>, vector<64x8xf32>
    tpu.vector_store %arg4[%c0_27, %c0_28], %71 {strides = array<i32>} : memref<64x8xf32, #tpu.memory_space<vmem>>, vector<64x8xf32>,
    return
  }
  func.func @transform_0(%arg0: i32) -> (i32, i32) {
    %c0_i32 = arith.constant 0 : i32
    %c0_i32_0 = arith.constant 0 : i32
    %c0_i32_1 = arith.constant 0 : i32
    return %c0_i32, %c0_i32_0 : i32, i32
  }
  func.func @transform_1(%arg0: i32) -> (i32, i32) {
    %c0_i32 = arith.constant 0 : i32
    %c0_i32_0 = arith.constant 0 : i32
    %c0_i32_1 = arith.constant 0 : i32
    return %c0_i32, %c0_i32_0 : i32, i32
  }
  func.func @transform_2(%arg0: i32) -> (i32, i32) {
    %c0_i32 = arith.constant 0 : i32
    %c0_i32_0 = arith.constant 0 : i32
    %c0_i32_1 = arith.constant 0 : i32
    return %c0_i32, %c0_i32_0 : i32, i32
  }
  func.func @transform_3(%arg0: i32) -> (i32, i32) {
    %c0_i32 = arith.constant 0 : i32
    %c0_i32_0 = arith.constant 0 : i32
    %c0_i32_1 = arith.constant 0 : i32
    return %c0_i32, %c0_i32_0 : i32, i32
  }
}

</mosaic_0001>

<bundles_post_ra>
// kernel: tpu_custom_call.1
= control target key start
LH: loop header
LB: loop body
LE: loop exit
PB: predicated region body
PF: predicated region fallthrough
CT: control target
= control target key end

     0   :  { %vm54_vm0 = vcmask 130048   ;;  %vm140_vm1 = vcmask 261120   ;;  %vm632_vm2 = vcmask 64512   ;;  %s1021_s1 = inlined_call_operand.vmem [shape: bf16[80,32], index: 1, kind: input, shape index: {}]   ;;  %s1022_s0 = inlined_call_operand.vmem [shape: f32[64,16], index: 0, kind: input, shape index: {}]   ;;  %s1023_s2 = inlined_call_operand.vmem [shape: f32[8,32], index: 2, kind: input, shape index: {}]   ;;  %s1024_s3 = inlined_call_operand.vmem [shape: f32[64,8], index: 3, kind: output, shape index: {}]  }
   0x1   :  { %v722_v0 = vld [vmem:[%s1021_s1] sm:$0xff]   ;;  %v16_v2 = vld [vmem:[%s1022_s0 + $0x8] sm:$0xff]  ;;  %v17_v3 = vld [vmem:[%s1022_s0 + $0x10] sm:$0xff] }
   0x2   :  { %v15_v1 = vld [vmem:[%s1022_s0] sm:$0xff]  ;;  %686 = vmatprep.subr.bf16.mxu0 %v722_v0  ;;  %720 = vmatprep.subr.bf16.mxu1 %v722_v0  ;;  %v18_v5 = vld [vmem:[%s1022_s0 + $0x18] sm:$0xff]  ;;  %v20_v7 = vld [vmem:[%s1022_s0 + $0x28] sm:$0xff] }
   0x3   :  { %v40_v4 = vpack.c.bf16 %v16_v2, %v15_v1  ;;  %v19_v6 = vld [vmem:[%s1022_s0 + $0x20] sm:$0xff]  ;;  %687 = vmatpush3.bf16.msra.mxu0 %v722_v0  ;;  %721 = vmatpush3.bf16.msra.mxu1 %v722_v0  ;;  %v41_v8 = vpack.c.bf16 %v18_v5, %v17_v3  ;;  %v21_v10 = vld [vmem:[%s1022_s0 + $0x30] sm:$0xff]  ;;  %v22_v11 = vld [vmem:[%s1022_s0 + $0x38] sm:$0xff] }
   0x4   :  { %v42_v9 = vpack.c.bf16 %v20_v7, %v19_v6  ;;  %v43_v12 = vpack.c.bf16 %v22_v11, %v21_v10  ;;  %v645_v13 = vld [vmem:[%s1023_s2] ss:$0 sm:$0xff]  ;;  %v723_v62 = vld [vmem:[%s1021_s1 + $0x8] sm:$0xff]   ;;  %v724_v63 = vld [vmem:[%s1021_s1 + $0x10] sm:$0xff]  }
   0x5   :  { %688 = vmatprep.mubr.msk.bf16.mxu0 %vm54_vm0, %v40_v4  ;;  %696 = vmatprep.subr.bf16.mxu1 %v723_v62 }
   0x6   :  { %692 = vmatprep.mubr.msk.bf16.mxu1 %vm54_vm0, %v42_v9  ;;  %689 = vmatmul.mubr.msk.bf16.vlgmr.msra.gmra.mrb[0].mxu0 %vm54_vm0, %v41_v8 }
   0x7   :  { %693 = vmatmul.mubr.msk.bf16.vlgmr.msra.gmra.mrb[0].mxu1 %vm54_vm0, %v43_v12 }
   0x8   :  { %697 = vmatpush3.bf16.msra.mxu1 %v723_v62 }
   0x9   :  { %698 = vmatprep.subr.bf16.mxu1 %v724_v63 }
   0xc   :  { %699 = vmatpush3.bf16.msra.mxu1 %v724_v63 }
  0xd9   :  { %v690_v14 = vpop.f32.mrb[0].mxu0 }
  0xda   :  { %v694_v15 = vpop.f32.mrb[0].mxu1  ;;  %v110_v16 = vadd.f32 %v690_v14, %v645_v13  ;;  %v101_v17 = vpop.f32.mrb[1].mxu0 }
  0xdb   :  { %v117_v18 = vpop.f32.mrb[1].mxu1  ;;  %v102_v19 = vadd.f32 %v645_v13, %v101_v17  ;;  %v691_v20 = vpop.f32.mrb[2].mxu0  ;;  %v126_v45 = vadd.f32 %v694_v15, %v645_v13 }
  0xdc   :  { %v118_v21 = vadd.f32 %v645_v13, %v117_v18  ;;  %v695_v22 = vpop.f32.mrb[2].mxu1  ;;  %v813_v23 = vmax.f32 %v110_v16, 0.0  ;;  %v113_v24 = vadd.f32 %v691_v20, %v645_v13  ;;  %v104_v25 = vpop.f32.mrb[3].mxu0 }
  0xdd   :  { %v120_v26 = vpop.f32.mrb[3].mxu1  ;;  %v815_v27 = vmax.f32 %v102_v19, 0.0  ;;  %v105_v34 = vadd.f32 %v645_v13, %v104_v25  ;;  %v129_v42 = vadd.f32 %v695_v22, %v645_v13  ;;  %v850_v50 = vmax.f32 %v126_v45, 0.0 }
  0xde   :  { %v817_v28 = vmax.f32 %v118_v21, 0.0  ;;  %v819_v29 = vmax.f32 %v113_v24, 0.0  ;;  %v121_v30 = vadd.f32 %v645_v13, %v120_v26  ;;  %v147_v31 = vsel %vm140_vm1, %v813_v23, 0.0 }
  0xdf   :  { %148 = vadd.xlane.f32.xlu1 %v147_v31  ;;  %v141_v32 = vsel %vm140_vm1, %v815_v27, 0.0  ;;  %v176_v37 = vmul.f32 %v813_v23, %v813_v23  ;;  %v833_v38 = vmax.f32 %v105_v34, 0.0  ;;  %v174_v47 = vmul.f32 %v815_v27, %v815_v27 }
  0xe0   :  { %142 = vadd.xlane.f32.xlu0 %v141_v32  ;;  %v153_v33 = vsel %vm140_vm1, %v817_v28, 0.0  ;;  %v827_v35 = vmax.f32 %v121_v30, 0.0  ;;  %v150_v36 = vsel %vm140_vm1, %v819_v29, 0.0  ;;  %v177_v40 = vmul.f32 %v819_v29, %v819_v29 }
  0xe1   :  { %v188_v41 = vsel %vm140_vm1, %v176_v37, 0.0  ;;  %v175_v44 = vmul.f32 %v833_v38, %v833_v38  ;;  %v144_v46 = vsel %vm140_vm1, %v833_v38, 0.0  ;;  %v847_v48 = vmax.f32 %v129_v42, 0.0 }
  0xe2   :  { %v156_v39 = vsel %vm140_vm1, %v827_v35, 0.0  ;;  %v191_v43 = vsel %vm140_vm1, %v177_v40, 0.0  ;;  %v182_v51 = vsel %vm140_vm1, %v174_v47, 0.0  ;;  %v179_v53 = vmul.f32 %v827_v35, %v827_v35 }
  0xe3   :  { %151 = vadd.xlane.f32.xlu1 %v150_v36  ;;  %v185_v49 = vsel %vm140_vm1, %v175_v44, 0.0  ;;  %v162_v52 = vsel %vm140_vm1, %v847_v48, 0.0  ;;  %v159_v54 = vsel %vm140_vm1, %v850_v50, 0.0  ;;  %v178_v55 = vmul.f32 %v817_v28, %v817_v28 }
  0xe4   :  { %154 = vadd.xlane.f32.xlu0 %v153_v33  ;;  %v197_v56 = vsel %vm140_vm1, %v179_v53, 0.0  ;;  %v181_v57 = vmul.f32 %v847_v48, %v847_v48  ;;  %v180_v59 = vmul.f32 %v850_v50, %v850_v50 }
  0xe5   :  { %v194_v58 = vsel %vm140_vm1, %v178_v55, 0.0 }
  0xe6   :  { %v203_v60 = vsel %vm140_vm1, %v181_v57, 0.0  ;;  %v200_v61 = vsel %vm140_vm1, %v180_v59, 0.0 }
  0xe7   :  { %157 = vadd.xlane.f32.xlu1 %v156_v39 }
  0xe8   :  { %189 = vadd.xlane.f32.xlu0 %v188_v41 }
  0xeb   :  { %192 = vadd.xlane.f32.xlu1 %v191_v43 }
  0xec   :  { %145 = vadd.xlane.f32.xlu0 %v144_v46 }
  0xef   :  { %186 = vadd.xlane.f32.xlu1 %v185_v49 }
  0xf0   :  { %183 = vadd.xlane.f32.xlu0 %v182_v51 }
  0xf3   :  { %163 = vadd.xlane.f32.xlu1 %v162_v52 }
  0xf4   :  { %160 = vadd.xlane.f32.xlu0 %v159_v54 }
  0xf7   :  { %198 = vadd.xlane.f32.xlu1 %v197_v56 }
  0xf8   :  { %195 = vadd.xlane.f32.xlu0 %v194_v58 }
  0xfb   :  { %204 = vadd.xlane.f32.xlu1 %v203_v60 }
  0xfc   :  { %201 = vadd.xlane.f32.xlu0 %v200_v61 }
 0x16c   :  { %v149_v0 = vpop.xlane.xlu1 %148 }
 0x16d   :  { %v143_v1 = vpop.xlane.xlu0 %142  ;;  %v168_v4 = vmul.f32 0.03125, %v149_v0 }
 0x16e   :  { %v166_v15 = vmul.f32 0.03125, %v143_v1 }
 0x16f   :  { %v216_v8 = vmul.f32 %v168_v4, %v168_v4  ;;  %v248_v56 = vsub.f32 %v813_v23, %v168_v4 }
 0x170   :  { %v152_v2 = vpop.xlane.xlu1 %151  ;;  %v214_v25 = vmul.f32 %v166_v15, %v166_v15  ;;  %v246_v23 = vsub.f32 %v815_v27, %v166_v15 }
 0x171   :  { %v155_v3 = vpop.xlane.xlu0 %154  ;;  %v169_v6 = vmul.f32 0.03125, %v152_v2 }
 0x172   :  { %v170_v37 = vmul.f32 0.03125, %v155_v3 }
 0x173   :  { %v217_v12 = vmul.f32 %v169_v6, %v169_v6  ;;  %v249_v52 = vsub.f32 %v819_v29, %v169_v6  ;;  %v651_v6 = vld [vmem:[%s1023_s2 + $0x1] ss:$0 sm:$0xff] }
 0x174   :  { %v158_v5 = vpop.xlane.xlu1 %157  ;;  %v218_v45 = vmul.f32 %v170_v37, %v170_v37 }
 0x175   :  { %v190_v7 = vpop.xlane.xlu0 %189  ;;  %v171_v33 = vmul.f32 0.03125, %v158_v5 }
 0x176   :  { %v208_v9 = vmul.f32 0.03125, %v190_v7 }
 0x177   :  { %v219_v41 = vmul.f32 %v171_v33, %v171_v33 }
 0x178   :  { %v224_v10 = vsub.f32 %v208_v9, %v216_v8  ;;  %v193_v11 = vpop.xlane.xlu1 %192 }
 0x179   :  { %v209_v13 = vmul.f32 0.03125, %v193_v11  ;;  %v146_v14 = vpop.xlane.xlu0 %145 }
 0x17a   :  { %v232_v16 = vadd.f32 1e-05, %v224_v10  ;;  %v167_v17 = vmul.f32 0.03125, %v146_v14 }
 0x17b   :  { %v225_v18 = vsub.f32 %v209_v13, %v217_v12 }
 0x17c   :  { %v215_v19 = vmul.f32 %v167_v17, %v167_v17  ;;  %v187_v20 = vpop.xlane.xlu1 %186  ;;  %727 = vrsqrt.f32 %v232_v16  ;;  %v247_v29 = vsub.f32 %v833_v38, %v167_v17  ;;  %v652_v38 = vld [vmem:[%s1023_s2 + $0x2] ss:$0 sm:$0xff]  ;;  %v251_v17 = vsub.f32 %v827_v35, %v171_v33 }
 0x17d   :  { %v233_v21 = vadd.f32 1e-05, %v225_v18  ;;  %v207_v22 = vmul.f32 0.03125, %v187_v20  ;;  %v184_v24 = vpop.xlane.xlu0 %183  ;;  %v250_v20 = vsub.f32 %v817_v28, %v170_v37 }
 0x17e   :  { %v206_v26 = vmul.f32 0.03125, %v184_v24 }
 0x17f   :  { %729 = vrsqrt.f32 %v233_v21  ;;  %v223_v30 = vsub.f32 %v207_v22, %v215_v19 }
 0x180   :  { %v222_v31 = vsub.f32 %v206_v26, %v214_v25  ;;  %v164_v32 = vpop.xlane.xlu1 %163 }
 0x181   :  { %v231_v34 = vadd.f32 1e-05, %v223_v30  ;;  %v161_v36 = vpop.xlane.xlu0 %160  ;;  %v875_v42 = vmul.f32 0.03125, %v164_v32 }
 0x182   :  { %v230_v39 = vadd.f32 1e-05, %v222_v31  ;;  %v172_v46 = vmul.f32 0.03125, %v161_v36 }
 0x183   :  { %731 = vrsqrt.f32 %v231_v34  ;;  %v221_v57 = vmul.f32 %v875_v42, %v875_v42  ;;  %v253_v30 = vsub.f32 %v847_v48, %v875_v42 }
 0x184   :  { %733 = vrsqrt.f32 %v230_v39  ;;  %v199_v40 = vpop.xlane.xlu1 %198  ;;  %v220_v62 = vmul.f32 %v172_v46, %v172_v46  ;;  %v252_v35 = vsub.f32 %v850_v50, %v172_v46  ;;  %v653_v50 = vld [vmem:[%s1023_s2 + $0x3] ss:$0 sm:$0xff] }
 0x185   :  { %v211_v43 = vmul.f32 0.03125, %v199_v40  ;;  %v196_v44 = vpop.xlane.xlu0 %195 }
 0x186   :  { %v210_v47 = vmul.f32 0.03125, %v196_v44  ;;  %v728_v51 = vpop.eup %727 }
 0x187   :  { %v227_v49 = vsub.f32 %v211_v43, %v219_v41  ;;  %v256_v2 = vmul.f32 %v728_v51, %v248_v56 }
 0x188   :  { %v226_v53 = vsub.f32 %v210_v47, %v218_v45  ;;  %v205_v54 = vpop.xlane.xlu1 %204 }
 0x189   :  { %v730_v55 = vpop.eup %729  ;;  %v235_v58 = vadd.f32 1e-05, %v227_v49  ;;  %v213_v59 = vmul.f32 0.03125, %v205_v54  ;;  %v202_v60 = vpop.xlane.xlu0 %201  ;;  %v268_v13 = vmul.f32 %v651_v6, %v256_v2 }
 0x18a   :  { %v257_v61 = vmul.f32 %v730_v55, %v249_v52  ;;  %v234_v63 = vadd.f32 1e-05, %v226_v53  ;;  %v212_v0 = vmul.f32 0.03125, %v202_v60 }
 0x18b   :  { %735 = vrsqrt.f32 %v235_v58  ;;  %v229_v1 = vsub.f32 %v213_v59, %v221_v57  ;;  %v280_v18 = vadd.f32 %v652_v38, %v268_v13 }
 0x18c   :  { %737 = vrsqrt.f32 %v234_v63  ;;  %v228_v3 = vsub.f32 %v212_v0, %v220_v62  ;;  %v269_v10 = vmul.f32 %v651_v6, %v257_v61 }
 0x18d   :  { %v732_v5 = vpop.eup %731  ;;  %v237_v4 = vadd.f32 1e-05, %v229_v1 }
 0x18e   :  { %v734_v7 = vpop.eup %733  ;;  %v236_v8 = vadd.f32 1e-05, %v228_v3  ;;  %v255_v9 = vmul.f32 %v732_v5, %v247_v29  ;;  %v281_v15 = vadd.f32 %v652_v38, %v269_v10 }
 0x18f   :  { %739 = vrsqrt.f32 %v237_v4  ;;  %v254_v11 = vmul.f32 %v734_v7, %v246_v23 }
 0x190   :  { %741 = vrsqrt.f32 %v236_v8  ;;  %v267_v12 = vmul.f32 %v651_v6, %v255_v9  ;;  %v287_v24 = vpack.c.bf16 %v281_v15, %v280_v18 }
 0x191   :  { %v266_v14 = vmul.f32 %v651_v6, %v254_v11 }
 0x192   :  { %v279_v27 = vadd.f32 %v652_v38, %v267_v12 }
 0x193   :  { %v278_v16 = vadd.f32 %v652_v38, %v266_v14 }
 0x195   :  { %v736_v19 = vpop.eup %735  ;;  %v286_v21 = vpack.c.bf16 %v279_v27, %v278_v16 }
 0x196   :  { %v738_v22 = vpop.eup %737  ;;  %v259_v25 = vmul.f32 %v736_v19, %v251_v17 }
 0x197   :  { %700 = vmatprep.mubr.msk.bf16.mxu1 %vm140_vm1, %v286_v21  ;;  %v258_v26 = vmul.f32 %v738_v22, %v250_v20 }
 0x198   :  { %701 = vmatmul.mubr.msk.bf16.vlgmr.msra.gmra.mrb[4].mxu1 %vm140_vm1, %v287_v24  ;;  %v271_v31 = vmul.f32 %v651_v6, %v259_v25 }
 0x199   :  { %v740_v32 = vpop.eup %739  ;;  %v270_v33 = vmul.f32 %v651_v6, %v258_v26 }
 0x19a   :  { %v742_v34 = vpop.eup %741  ;;  %v283_v36 = vadd.f32 %v652_v38, %v271_v31  ;;  %v261_v28 = vmul.f32 %v740_v32, %v253_v30  ;;  %v725_v31 = vld [vmem:[%s1021_s1 + $0x18] sm:$0xff]   ;;  %v726_v32 = vld [vmem:[%s1021_s1 + $0x20] sm:$0xff]  }
 0x19b   :  { %v282_v37 = vadd.f32 %v652_v38, %v270_v33  ;;  %v260_v39 = vmul.f32 %v742_v34, %v252_v35  ;;  %708 = vmatprep.subr.bf16.mxu0 %v725_v31 }
 0x19c   :  { %v273_v40 = vmul.f32 %v651_v6, %v261_v28  ;;  %709 = vmatpush3.bf16.msra.mxu0 %v725_v31 }
 0x19d   :  { %v288_v41 = vpack.c.bf16 %v283_v36, %v282_v37  ;;  %v272_v43 = vmul.f32 %v651_v6, %v260_v39  ;;  %710 = vmatprep.subr.bf16.mxu0 %v726_v32 }
 0x19e   :  { %v285_v44 = vadd.f32 %v652_v38, %v273_v40 }
 0x19f   :  { %704 = vmatprep.mubr.msk.bf16.mxu1 %vm140_vm1, %v288_v41  ;;  %v284_v45 = vadd.f32 %v652_v38, %v272_v43 }
 0x1a0   :  { %711 = vmatpush3.bf16.msra.mxu0 %v726_v32  ;;  %v660_v32 = vld [vmem:[%s1023_s2 + $0x4] ss:$0 sm:$0xff] }
 0x1a1   :  { %v289_v48 = vpack.c.bf16 %v285_v44, %v284_v45 }
 0x1a3   :  { %705 = vmatmul.mubr.msk.bf16.gmra.mrb[8].mxu1 %vm140_vm1, %v289_v48 }
 0x26b   :  { %v702_v42 = vpop.f32.mrb[4].mxu1 }
 0x26c   :  { %v361_v46 = vadd.f32 %v702_v42, %v653_v50  ;;  %v352_v47 = vpop.f32.mrb[5].mxu1 }
 0x26d   :  { %v353_v49 = vadd.f32 %v653_v50, %v352_v47  ;;  %v703_v51 = vpop.f32.mrb[6].mxu1 }
 0x26e   :  { %v901_v52 = vmax.f32 %v361_v46, 0.0  ;;  %v364_v53 = vadd.f32 %v703_v51, %v653_v50  ;;  %v355_v54 = vpop.f32.mrb[7].mxu1 }
 0x26f   :  { %v356_v55 = vadd.f32 %v653_v50, %v355_v54  ;;  %v903_v56 = vmax.f32 %v353_v49, 0.0 }
 0x270   :  { %v905_v57 = vmax.f32 %v364_v53, 0.0  ;;  %v397_v58 = vsel %vm140_vm1, %v901_v52, 0.0  ;;  %v425_v62 = vmul.f32 %v901_v52, %v901_v52 }
 0x271   :  { %398 = vadd.xlane.f32.xlu0 %v397_v58  ;;  %v909_v59 = vmax.f32 %v356_v55, 0.0  ;;  %v391_v61 = vsel %vm140_vm1, %v903_v56, 0.0  ;;  %v423_v23 = vmul.f32 %v903_v56, %v903_v56 }
 0x272   :  { %v400_v60 = vsel %vm140_vm1, %v905_v57, 0.0  ;;  %v426_v1 = vmul.f32 %v905_v57, %v905_v57  ;;  %v437_v5 = vsel %vm140_vm1, %v425_v62, 0.0 }
 0x273   :  { %401 = vadd.xlane.f32.xlu1 %v400_v60  ;;  %v394_v0 = vsel %vm140_vm1, %v909_v59, 0.0  ;;  %v424_v8 = vmul.f32 %v909_v59, %v909_v59  ;;  %v431_v11 = vsel %vm140_vm1, %v423_v23, 0.0 }
 0x274   :  { %v440_v7 = vsel %vm140_vm1, %v426_v1, 0.0 }
 0x275   :  { %392 = vadd.xlane.f32.xlu0 %v391_v61  ;;  %v434_v38 = vsel %vm140_vm1, %v424_v8, 0.0 }
 0x276   :  { %v706_v63 = vpop.f32.mrb[8].mxu1 }
 0x277   :  { %395 = vadd.xlane.f32.xlu1 %v394_v0  ;;  %v368_v2 = vpop.f32.mrb[9].mxu1  ;;  %v377_v29 = vadd.f32 %v706_v63, %v653_v50 }
 0x278   :  { %v707_v3 = vpop.f32.mrb[10].mxu1  ;;  %v369_v10 = vadd.f32 %v653_v50, %v368_v2 }
 0x279   :  { %438 = vadd.xlane.f32.xlu0 %v437_v5  ;;  %v371_v4 = vpop.f32.mrb[11].mxu1  ;;  %v380_v6 = vadd.f32 %v707_v3, %v653_v50  ;;  %v927_v9 = vmax.f32 %v377_v29, 0.0 }
 0x27a   :  { %v372_v13 = vadd.f32 %v653_v50, %v371_v4  ;;  %v933_v14 = vmax.f32 %v369_v10, 0.0 }
 0x27b   :  { %441 = vadd.xlane.f32.xlu1 %v440_v7  ;;  %v930_v12 = vmax.f32 %v380_v6, 0.0  ;;  %v409_v27 = vsel %vm140_vm1, %v927_v9, 0.0  ;;  %v429_v22 = vmul.f32 %v927_v9, %v927_v9 }
 0x27c   :  { %v937_v15 = vmax.f32 %v372_v13, 0.0  ;;  %v403_v17 = vsel %vm140_vm1, %v933_v14, 0.0  ;;  %v427_v18 = vmul.f32 %v933_v14, %v933_v14 }
 0x27d   :  { %432 = vadd.xlane.f32.xlu0 %v431_v11  ;;  %v412_v16 = vsel %vm140_vm1, %v930_v12, 0.0  ;;  %v430_v25 = vmul.f32 %v930_v12, %v930_v12  ;;  %v449_v26 = vsel %vm140_vm1, %v429_v22, 0.0 }
 0x27e   :  { %v406_v19 = vsel %vm140_vm1, %v937_v15, 0.0  ;;  %v428_v20 = vmul.f32 %v937_v15, %v937_v15  ;;  %v443_v21 = vsel %vm140_vm1, %v427_v18, 0.0 }
 0x27f   :  { %435 = vadd.xlane.f32.xlu1 %v434_v38  ;;  %v452_v30 = vsel %vm140_vm1, %v430_v25, 0.0 }
 0x280   :  { %v446_v24 = vsel %vm140_vm1, %v428_v20, 0.0 }
 0x281   :  { %410 = vadd.xlane.f32.xlu0 %v409_v27 }
 0x283   :  { %413 = vadd.xlane.f32.xlu1 %v412_v16 }
 0x285   :  { %404 = vadd.xlane.f32.xlu0 %v403_v17 }
 0x287   :  { %407 = vadd.xlane.f32.xlu1 %v406_v19 }
 0x289   :  { %444 = vadd.xlane.f32.xlu0 %v443_v21 }
 0x28b   :  { %447 = vadd.xlane.f32.xlu1 %v446_v24 }
 0x28d   :  { %450 = vadd.xlane.f32.xlu0 %v449_v26 }
 0x28f   :  { %453 = vadd.xlane.f32.xlu1 %v452_v30 }
 0x2fe   :  { %v399_v35 = vpop.xlane.xlu0 %398 }
 0x2ff   :  { %v417_v36 = vmul.f32 0.03125, %v399_v35 }
 0x300   :  { %v402_v33 = vpop.xlane.xlu1 %401 }
 0x301   :  { %v418_v37 = vmul.f32 0.03125, %v402_v33  ;;  %v465_v40 = vmul.f32 %v417_v36, %v417_v36  ;;  %v497_v16 = vsub.f32 %v901_v52, %v417_v36 }
 0x302   :  { %v393_v34 = vpop.xlane.xlu0 %392 }
 0x303   :  { %v415_v41 = vmul.f32 0.03125, %v393_v34  ;;  %v466_v45 = vmul.f32 %v418_v37, %v418_v37  ;;  %v498_v11 = vsub.f32 %v905_v57, %v418_v37 }
 0x304   :  { %v396_v28 = vpop.xlane.xlu1 %395 }
 0x305   :  { %v416_v48 = vmul.f32 0.03125, %v396_v28  ;;  %v463_v47 = vmul.f32 %v415_v41, %v415_v41  ;;  %v495_v20 = vsub.f32 %v903_v56, %v415_v41 }
 0x306   :  { %v439_v39 = vpop.xlane.xlu0 %438 }
 0x307   :  { %v457_v43 = vmul.f32 0.03125, %v439_v39  ;;  %v464_v55 = vmul.f32 %v416_v48, %v416_v48  ;;  %v496_v52 = vsub.f32 %v909_v59, %v416_v48 }
 0x308   :  { %v442_v44 = vpop.xlane.xlu1 %441 }
 0x309   :  { %v473_v50 = vsub.f32 %v457_v43, %v465_v40  ;;  %v458_v42 = vmul.f32 0.03125, %v442_v44 }
 0x30a   :  { %v433_v46 = vpop.xlane.xlu0 %432 }
 0x30b   :  { %v481_v49 = vadd.f32 1e-05, %v473_v50  ;;  %v474_v51 = vsub.f32 %v458_v42, %v466_v45  ;;  %v455_v53 = vmul.f32 0.03125, %v433_v46  ;;  %v661_v50 = vld [vmem:[%s1023_s2 + $0x5] ss:$0 sm:$0xff] }
 0x30c   :  { %v436_v54 = vpop.xlane.xlu1 %435 }
 0x30d   :  { %v482_v58 = vadd.f32 1e-05, %v474_v51  ;;  %v471_v60 = vsub.f32 %v455_v53, %v463_v47  ;;  %v456_v61 = vmul.f32 0.03125, %v436_v54  ;;  %743 = vrsqrt.f32 %v481_v49 }
 0x30e   :  { %v411_v62 = vpop.xlane.xlu0 %410 }
 0x30f   :  { %745 = vrsqrt.f32 %v482_v58  ;;  %v479_v63 = vadd.f32 1e-05, %v471_v60  ;;  %v472_v0 = vsub.f32 %v456_v61, %v464_v55  ;;  %v963_v4 = vmul.f32 0.03125, %v411_v62 }
 0x310   :  { %v414_v1 = vpop.xlane.xlu1 %413 }
 0x311   :  { %747 = vrsqrt.f32 %v479_v63  ;;  %v480_v2 = vadd.f32 1e-05, %v472_v0  ;;  %v422_v13 = vmul.f32 0.03125, %v414_v1  ;;  %v469_v22 = vmul.f32 %v963_v4, %v963_v4 }
 0x312   :  { %v405_v29 = vpop.xlane.xlu0 %404  ;;  %v501_v62 = vsub.f32 %v927_v9, %v963_v4  ;;  %v662_v9 = vld [vmem:[%s1023_s2 + $0x6] ss:$0 sm:$0xff] }
 0x313   :  { %749 = vrsqrt.f32 %v480_v2  ;;  %v419_v3 = vmul.f32 0.03125, %v405_v29  ;;  %v470_v35 = vmul.f32 %v422_v13, %v422_v13  ;;  %v502_v2 = vsub.f32 %v930_v12, %v422_v13 }
 0x314   :  { %v408_v5 = vpop.xlane.xlu1 %407 }
 0x315   :  { %v420_v23 = vmul.f32 0.03125, %v408_v5  ;;  %v467_v7 = vmul.f32 %v419_v3, %v419_v3  ;;  %v499_v54 = vsub.f32 %v933_v14, %v419_v3 }
 0x316   :  { %v445_v6 = vpop.xlane.xlu0 %444 }
 0x317   :  { %v459_v8 = vmul.f32 0.03125, %v445_v6  ;;  %v744_v10 = vpop.eup %743  ;;  %v468_v17 = vmul.f32 %v420_v23, %v420_v23  ;;  %v500_v58 = vsub.f32 %v937_v15, %v420_v23 }
 0x318   :  { %v448_v38 = vpop.xlane.xlu1 %447  ;;  %v505_v26 = vmul.f32 %v744_v10, %v497_v16 }
 0x319   :  { %v746_v27 = vpop.eup %745  ;;  %v475_v18 = vsub.f32 %v459_v8, %v467_v7  ;;  %v460_v19 = vmul.f32 0.03125, %v448_v38 }
 0x31a   :  { %v506_v21 = vmul.f32 %v746_v27, %v498_v11  ;;  %v451_v24 = vpop.xlane.xlu0 %450  ;;  %v517_v45 = vmul.f32 %v660_v32, %v505_v26 }
 0x31b   :  { %v748_v25 = vpop.eup %747  ;;  %v483_v30 = vadd.f32 1e-05, %v475_v18  ;;  %v476_v31 = vsub.f32 %v460_v19, %v468_v17  ;;  %v461_v57 = vmul.f32 0.03125, %v451_v24 }
 0x31c   :  { %v454_v33 = vpop.xlane.xlu1 %453  ;;  %v503_v34 = vmul.f32 %v748_v25, %v495_v20  ;;  %v518_v56 = vmul.f32 %v660_v32, %v506_v21  ;;  %v529_v49 = vadd.f32 %v661_v50, %v517_v45 }
 0x31d   :  { %v750_v36 = vpop.eup %749  ;;  %751 = vrsqrt.f32 %v483_v30  ;;  %v484_v28 = vadd.f32 1e-05, %v476_v31  ;;  %v477_v37 = vsub.f32 %v461_v57, %v469_v22  ;;  %v462_v39 = vmul.f32 0.03125, %v454_v33 }
 0x31e   :  { %v504_v40 = vmul.f32 %v750_v36, %v496_v52  ;;  %v515_v41 = vmul.f32 %v660_v32, %v503_v34  ;;  %v530_v42 = vadd.f32 %v661_v50, %v518_v56 }
 0x31f   :  { %753 = vrsqrt.f32 %v484_v28  ;;  %v485_v43 = vadd.f32 1e-05, %v477_v37  ;;  %v478_v44 = vsub.f32 %v462_v39, %v470_v35 }
 0x320   :  { %v516_v59 = vmul.f32 %v660_v32, %v504_v40  ;;  %v527_v46 = vadd.f32 %v661_v50, %v515_v41  ;;  %v536_v53 = vpack.c.bf16 %v530_v42, %v529_v49 }
 0x321   :  { %755 = vrsqrt.f32 %v485_v43  ;;  %v486_v48 = vadd.f32 1e-05, %v478_v44 }
 0x322   :  { %v528_v47 = vadd.f32 %v661_v50, %v516_v59 }
 0x323   :  { %757 = vrsqrt.f32 %v486_v48 }
 0x324   :  { %v535_v51 = vpack.c.bf16 %v528_v47, %v527_v46 }
 0x326   :  { %712 = vmatprep.mubr.msk.bf16.mxu0 %vm140_vm1, %v535_v51 }
 0x327   :  { %v752_v55 = vpop.eup %751  ;;  %713 = vmatmul.mubr.msk.bf16.vlgmr.msra.gmra.mrb[4].mxu0 %vm140_vm1, %v536_v53 }
 0x328   :  { %v507_v60 = vmul.f32 %v752_v55, %v499_v54 }
 0x329   :  { %v754_v61 = vpop.eup %753 }
 0x32a   :  { %v508_v63 = vmul.f32 %v754_v61, %v500_v58  ;;  %v519_v0 = vmul.f32 %v660_v32, %v507_v60 }
 0x32b   :  { %v756_v1 = vpop.eup %755 }
 0x32c   :  { %v520_v29 = vmul.f32 %v660_v32, %v508_v63  ;;  %v509_v5 = vmul.f32 %v756_v1, %v501_v62  ;;  %v531_v3 = vadd.f32 %v661_v50, %v519_v0 }
 0x32d   :  { %v758_v14 = vpop.eup %757 }
 0x32e   :  { %v532_v6 = vadd.f32 %v661_v50, %v520_v29  ;;  %v510_v7 = vmul.f32 %v758_v14, %v502_v2  ;;  %v521_v8 = vmul.f32 %v660_v32, %v509_v5 }
 0x330   :  { %v537_v10 = vpack.c.bf16 %v532_v6, %v531_v3  ;;  %v522_v11 = vmul.f32 %v660_v32, %v510_v7  ;;  %v533_v15 = vadd.f32 %v661_v50, %v521_v8 }
 0x332   :  { %716 = vmatprep.mubr.msk.bf16.mxu0 %vm140_vm1, %v537_v10  ;;  %v534_v23 = vadd.f32 %v661_v50, %v522_v11 }
 0x334   :  { %v538_v38 = vpack.c.bf16 %v534_v23, %v533_v15 }
 0x336   :  { %717 = vmatmul.mubr.msk.bf16.gmra.mrb[8].mxu0 %vm140_vm1, %v538_v38 }
 0x3fa   :  { %v714_v12 = vpop.f32.mrb[4].mxu0 }
 0x3fb   :  { %v610_v4 = vadd.f32 %v714_v12, %v662_v9  ;;  %v601_v13 = vpop.f32.mrb[5].mxu0 }
 0x3fc   :  { %v602_v27 = vadd.f32 %v662_v9, %v601_v13  ;;  %v715_v16 = vpop.f32.mrb[6].mxu0 }
 0x3fd   :  { %635 = vst.msk [vmem:[%s1024_s3 + $0x10] sm:$0xff] %vm632_vm2, %v610_v4  ;;  %v613_v17 = vadd.f32 %v715_v16, %v662_v9  ;;  %v604_v18 = vpop.f32.mrb[7].mxu0 }
 0x3fe   :  { %633 = vst.msk [vmem:[%s1024_s3] sm:$0xff] %vm632_vm2, %v602_v27  ;;  %v605_v19 = vadd.f32 %v662_v9, %v604_v18 }
 0x3ff   :  { %636 = vst.msk [vmem:[%s1024_s3 + $0x18] sm:$0xff] %vm632_vm2, %v613_v17 }
 0x400   :  { %634 = vst.msk [vmem:[%s1024_s3 + $0x8] sm:$0xff] %vm632_vm2, %v605_v19 }
 0x409   :  { %v718_v20 = vpop.f32.mrb[8].mxu0 }
 0x40a   :  { %v626_v21 = vadd.f32 %v718_v20, %v662_v9  ;;  %v617_v22 = vpop.f32.mrb[9].mxu0 }
 0x40b   :  { %v618_v24 = vadd.f32 %v662_v9, %v617_v22  ;;  %v719_v25 = vpop.f32.mrb[10].mxu0 }
 0x40c   :  { %639 = vst.msk [vmem:[%s1024_s3 + $0x30] sm:$0xff] %vm632_vm2, %v626_v21  ;;  %v629_v26 = vadd.f32 %v719_v25, %v662_v9  ;;  %v620_v30 = vpop.f32.mrb[11].mxu0 }
 0x40d   :  { %637 = vst.msk [vmem:[%s1024_s3 + $0x20] sm:$0xff] %vm632_vm2, %v618_v24  ;;  %v621_v31 = vadd.f32 %v662_v9, %v620_v30 }
 0x40e   :  { %640 = vst.msk [vmem:[%s1024_s3 + $0x38] sm:$0xff] %vm632_vm2, %v629_v26 }
 0x40f   :  { %638 = vst.msk [vmem:[%s1024_s3 + $0x28] sm:$0xff] %vm632_vm2, %v621_v31 }

</bundles_post_ra>
